<compile_context>
chip_gen: v7x
topology: tpu7x:2x2x1
jax: 0.10.0
libtpu: 0.0.40
codegen_flags: <defaults>
</compile_context>

<pallas_src>
import functools

import jax
import jax.numpy as jnp
from jax.experimental import pallas as pl
from jax.experimental.pallas import tpu as pltpu

LANE = 128  # pad every feature dim to one full lane width


def _fused_mlp_kernel(x_ref, w_ref, b_ref, o_ref, *, n_layers, activation_last):
    # x_ref: [B, 128] f32   w_ref: [L, 128, 128] bf16   b_ref: [L, 1, 128] f32
    # o_ref: [B, 128] f32
    s = x_ref[...]                                # f32 activations live in vregs
    for l in range(n_layers):                     # static unroll (LLO visibility)
        s = jnp.tanh(s)                           # EUP: tanh BEFORE every linear (f32, v5e-safe)
        s = jnp.dot(s.astype(jnp.bfloat16),       # explicit bf16 cast at MXU input only
                    w_ref[l],                     # bf16 weights -> single-pass matmul
                    preferred_element_type=jnp.float32)   # f32 accumulate on MXU
        s = s + b_ref[l]                          # VPU: f32 (1,128) broadcast over batch
    if activation_last:
        s = jnp.tanh(s)                           # optional trailing activation, fused
    o_ref[...] = s.astype(o_ref.dtype)            # lane-dense (128-wide) store


def init_fc_params(key, input_shape, output_shape, num_layers, n=100):
    """Deterministic synthetic init; mirrors the PyTorch layer structure.

    layers: Linear(input_shape, n), num_layers x Linear(n, n), Linear(n, output_shape)
    Weights stored as [in, out] (pre-transposed from torch's [out, in]).
    """
    dims = [(input_shape, n)] + [(n, n)] * num_layers + [(n, output_shape)]
    params = []
    for (fin, fout) in dims:
        key, kw, kb = jax.random.split(key, 3)
        bound = 1.0 / jnp.sqrt(float(fin))  # same scale as torch.nn.Linear default
        w = jax.random.uniform(kw, (fin, fout), jnp.float32, -bound, bound)
        b = jax.random.uniform(kb, (fout,), jnp.float32, -bound, bound)
        params.append((w, b))
    return params


def pack_params(params, lane=LANE):
    """Zero-pad W to [lane, lane] (stored bf16) and b to [1, lane] (f32); stack over layers.

    Zero padding is exact for this network: tanh(0)=0 and zero rows/cols of W
    keep all padded lanes identically zero through every layer.
    """
    ws, bs = [], []
    for (w, b) in params:
        fin, fout = w.shape
        wp = jnp.zeros((lane, lane), jnp.float32).at[:fin, :fout].set(w)
        bp = jnp.zeros((1, lane), jnp.float32).at[0, :fout].set(b)
        ws.append(wp.astype(jnp.bfloat16))   # bf16 weight storage: halves DMA, single-pass MXU
        bs.append(bp)                        # f32 bias: exact VPU add
    return jnp.stack(ws), jnp.stack(bs)      # [L, lane, lane] bf16, [L, 1, lane] f32


def fc_forward(y, w_packed, b_packed, out_features, activation_last):
    B, fin = y.shape
    L = w_packed.shape[0]
    # Zero-pad the input to the lane width (exact; see pack_params comment).
    x_pad = jnp.zeros((B, LANE), jnp.float32).at[:, :fin].set(y.astype(jnp.float32))

    kernel = functools.partial(
        _fused_mlp_kernel, n_layers=L, activation_last=activation_last)

    out_pad = pl.pallas_call(
        kernel,
        out_shape=jax.ShapeDtypeStruct((B, LANE), jnp.float32),
        in_specs=[
            pl.BlockSpec(memory_space=pltpu.MemorySpace.VMEM),  # x        [B, 128]   f32
            pl.BlockSpec(memory_space=pltpu.MemorySpace.VMEM),  # weights  [L,128,128] bf16
            pl.BlockSpec(memory_space=pltpu.MemorySpace.VMEM),  # biases   [L, 1, 128] f32
        ],
        out_specs=pl.BlockSpec(memory_space=pltpu.MemorySpace.VMEM),
        # ~0.15 MB resident -> far under scoped-VMEM defaults on v5e/v6e/v7x.
        # If n / num_layers scale, block the layer dim and set
        # pltpu.CompilerParams(vmem_limit_bytes=...) (v7x: 64 MiB physical).
    )(x_pad, w_packed, b_packed)

    return out_pad[:, :out_features].astype(y.dtype)   # drop the exact-zero padded lanes


if __name__ == "__main__":
    # Small, forward-consistent shapes.
    batch = 8
    input_shape = 32
    output_shape = 16
    num_layers = 2
    activation_last = True

    key = jax.random.PRNGKey(0)
    key, kx = jax.random.split(key)
    x = jax.random.normal(kx, (batch, input_shape), dtype=jnp.float32)

    params = init_fc_params(key, input_shape, output_shape, num_layers)
    w_packed, b_packed = pack_params(params)

    fwd = jax.jit(
        lambda xx: fc_forward(xx, w_packed, b_packed, output_shape, activation_last))
    out = jax.block_until_ready(fwd(x))
    assert out.shape == (batch, output_shape)

    # Reference 1: mirrors the kernel's dtype flow (bf16 dot operands, f32 acc).
    s = x
    for (w, b) in params:
        s = jnp.dot(jnp.tanh(s).astype(jnp.bfloat16), w.astype(jnp.bfloat16),
                    preferred_element_type=jnp.float32) + b
    if activation_last:
        s = jnp.tanh(s)
    assert jnp.allclose(out, s, atol=2e-3, rtol=2e-3)

    # Reference 2: pure-f32 math (sanity check; looser tol for bf16 operands).
    s32 = x
    for (w, b) in params:
        s32 = jnp.tanh(s32) @ w + b
    if activation_last:
        s32 = jnp.tanh(s32)
    assert jnp.allclose(out, s32, atol=5e-2, rtol=5e-2)

    print("KERNEL_OK")
</pallas_src>

<mosaic_0001>
module attributes {stable_mosaic.version = 11 : i64} {
  func.func @_fused_mlp_kernel(%arg0: memref<8x128xf32, #tpu.memory_space<vmem>>, %arg1: memref<4x128x128xbf16, #tpu.memory_space<vmem>>, %arg2: memref<4x1x128xf32, #tpu.memory_space<vmem>>, %arg3: memref<8x128xf32, #tpu.memory_space<vmem>>) attributes {dimension_semantics = [], scalar_prefetch = 0 : i64, scratch_operands = 0 : i64, tpu.core_type = #tpu.core_type<tc>} {
    %c0 = arith.constant 0 : index
    %c0_0 = arith.constant 0 : index
    %0 = vector.load %arg0[%c0, %c0_0] : memref<8x128xf32, #tpu.memory_space<vmem>>, vector<8x128xf32>
    %1 = math.tanh %0 : vector<8x128xf32>
    %2 = arith.truncf %1 : vector<8x128xf32> to vector<8x128xbf16>
    %c0_1 = arith.constant 0 : index
    %c0_2 = arith.constant 0 : index
    %c0_3 = arith.constant 0 : index
    %3 = vector.load %arg1[%c0_1, %c0_2, %c0_3] : memref<4x128x128xbf16, #tpu.memory_space<vmem>>, vector<1x128x128xbf16>
    %4 = vector.shape_cast %3 : vector<1x128x128xbf16> to vector<128x128xbf16>
    %cst = arith.constant dense<0.000000e+00> : vector<8x128xf32>
    %5 = tpu.matmul %2, %4, %cst {dimension_numbers = #tpu.dot_dimension_numbers<[1], [0], [0], [1], [0, 0, 1, 1], [], []>} : vector<8x128xbf16>, vector<128x128xbf16>, vector<8x128xf32> -> vector<8x128xf32>
    %c0_4 = arith.constant 0 : index
    %c0_5 = arith.constant 0 : index
    %c0_6 = arith.constant 0 : index
    %6 = vector.load %arg2[%c0_4, %c0_5, %c0_6] : memref<4x1x128xf32, #tpu.memory_space<vmem>>, vector<1x1x128xf32>
    %7 = vector.shape_cast %6 : vector<1x1x128xf32> to vector<1x128xf32>
    %8 = vector.broadcast %7 : vector<1x128xf32> to vector<8x128xf32>
    %9 = arith.addf %5, %8 : vector<8x128xf32>
    %10 = math.tanh %9 : vector<8x128xf32>
    %11 = arith.truncf %10 : vector<8x128xf32> to vector<8x128xbf16>
    %c1 = arith.constant 1 : index
    %c0_7 = arith.constant 0 : index
    %c0_8 = arith.constant 0 : index
    %12 = vector.load %arg1[%c1, %c0_7, %c0_8] : memref<4x128x128xbf16, #tpu.memory_space<vmem>>, vector<1x128x128xbf16>
    %13 = vector.shape_cast %12 : vector<1x128x128xbf16> to vector<128x128xbf16>
    %cst_9 = arith.constant dense<0.000000e+00> : vector<8x128xf32>
    %14 = tpu.matmul %11, %13, %cst_9 {dimension_numbers = #tpu.dot_dimension_numbers<[1], [0], [0], [1], [0, 0, 1, 1], [], []>} : vector<8x128xbf16>, vector<128x128xbf16>, vector<8x128xf32> -> vector<8x128xf32>
    %c1_10 = arith.constant 1 : index
    %c0_11 = arith.constant 0 : index
    %c0_12 = arith.constant 0 : index
    %15 = vector.load %arg2[%c1_10, %c0_11, %c0_12] : memref<4x1x128xf32, #tpu.memory_space<vmem>>, vector<1x1x128xf32>
    %16 = vector.shape_cast %15 : vector<1x1x128xf32> to vector<1x128xf32>
    %17 = vector.broadcast %16 : vector<1x128xf32> to vector<8x128xf32>
    %18 = arith.addf %14, %17 : vector<8x128xf32>
    %19 = math.tanh %18 : vector<8x128xf32>
    %20 = arith.truncf %19 : vector<8x128xf32> to vector<8x128xbf16>
    %c2 = arith.constant 2 : index
    %c0_13 = arith.constant 0 : index
    %c0_14 = arith.constant 0 : index
    %21 = vector.load %arg1[%c2, %c0_13, %c0_14] : memref<4x128x128xbf16, #tpu.memory_space<vmem>>, vector<1x128x128xbf16>
    %22 = vector.shape_cast %21 : vector<1x128x128xbf16> to vector<128x128xbf16>
    %cst_15 = arith.constant dense<0.000000e+00> : vector<8x128xf32>
    %23 = tpu.matmul %20, %22, %cst_15 {dimension_numbers = #tpu.dot_dimension_numbers<[1], [0], [0], [1], [0, 0, 1, 1], [], []>} : vector<8x128xbf16>, vector<128x128xbf16>, vector<8x128xf32> -> vector<8x128xf32>
    %c2_16 = arith.constant 2 : index
    %c0_17 = arith.constant 0 : index
    %c0_18 = arith.constant 0 : index
    %24 = vector.load %arg2[%c2_16, %c0_17, %c0_18] : memref<4x1x128xf32, #tpu.memory_space<vmem>>, vector<1x1x128xf32>
    %25 = vector.shape_cast %24 : vector<1x1x128xf32> to vector<1x128xf32>
    %26 = vector.broadcast %25 : vector<1x128xf32> to vector<8x128xf32>
    %27 = arith.addf %23, %26 : vector<8x128xf32>
    %28 = math.tanh %27 : vector<8x128xf32>
    %29 = arith.truncf %28 : vector<8x128xf32> to vector<8x128xbf16>
    %c3 = arith.constant 3 : index
    %c0_19 = arith.constant 0 : index
    %c0_20 = arith.constant 0 : index
    %30 = vector.load %arg1[%c3, %c0_19, %c0_20] : memref<4x128x128xbf16, #tpu.memory_space<vmem>>, vector<1x128x128xbf16>
    %31 = vector.shape_cast %30 : vector<1x128x128xbf16> to vector<128x128xbf16>
    %cst_21 = arith.constant dense<0.000000e+00> : vector<8x128xf32>
    %32 = tpu.matmul %29, %31, %cst_21 {dimension_numbers = #tpu.dot_dimension_numbers<[1], [0], [0], [1], [0, 0, 1, 1], [], []>} : vector<8x128xbf16>, vector<128x128xbf16>, vector<8x128xf32> -> vector<8x128xf32>
    %c3_22 = arith.constant 3 : index
    %c0_23 = arith.constant 0 : index
    %c0_24 = arith.constant 0 : index
    %33 = vector.load %arg2[%c3_22, %c0_23, %c0_24] : memref<4x1x128xf32, #tpu.memory_space<vmem>>, vector<1x1x128xf32>
    %34 = vector.shape_cast %33 : vector<1x1x128xf32> to vector<1x128xf32>
    %35 = vector.broadcast %34 : vector<1x128xf32> to vector<8x128xf32>
    %36 = arith.addf %32, %35 : vector<8x128xf32>
    %37 = math.tanh %36 : vector<8x128xf32>
    %c0_25 = arith.constant 0 : index
    %c0_26 = arith.constant 0 : index
    %38 = vector.load %arg3[%c0_25, %c0_26] : memref<8x128xf32, #tpu.memory_space<vmem>>, vector<8x128xf32>
    tpu.vector_store %arg3[%c0_25, %c0_26], %37 {strides = array<i32>} : memref<8x128xf32, #tpu.memory_space<vmem>>, vector<8x128xf32>,
    return
  }
}

</mosaic_0001>

<bundles_post_ra>
// kernel: _lambda_.1
= control target key start
LH: loop header
LB: loop body
LE: loop exit
PB: predicated region body
PF: predicated region fallthrough
CT: control target
= control target key end

     0   :  { %8 = vsyncpa [#allocation3], 0  ;;  %s862_s0 = inlined_call_operand.vmem [shape: f32[8,128], index: 0, kind: input, shape index: {}]   ;;  %s863_s1 = inlined_call_operand.hbm [shape: bf16[4,128,128], index: 1, kind: input, shape index: {}]   ;;  %s864_s2 = inlined_call_operand.vmem [shape: f32[4,1,128], index: 2, kind: input, shape index: {}]   ;;  %s865_s3 = inlined_call_operand.hbm [shape: f32[8,128], index: 3, kind: output, shape index: {}]  }
   0x1   :  { %9 = vsyncpa [#allocation4], 0  ;;  %s757_s12 = smov [#allocation2]   ;;  %s709_s16 = scalar_lea.hbm %s863_s1, 4096 }
   0x2   :  { %s17_s13 = sshll.u32 %s757_s12, 4  ;;  %p710_p0 = scmp.ne.s32.totalorder %s863_s1, %s709_s16  ;;  %s18_s13 = int_to_ptr.vmem [resolvable:$true] %s17_s13 }
   0x3   :  { %p713_p1 = scmp.lt.u32.totalorder %s709_s16, %s863_s1 }
   0x5   :  { %p715_p2 = pnand %p713_p1, %p710_p0 }
   0x7   :  { %718 = shalt.err (!%p715_p2)
}
   0x8   :  { %s719_s21 = scalar_lea.vmem %s18_s13, 4096  ;;  %p724_p4 = scmp.lt.s32.totalorder %s18_s13, %s18_s13 }
   0x9   :  { %p720_p3 = scmp.ne.s32.totalorder %s18_s13, %s719_s21  ;;  %p725_p5 = scmp.lt.s32.totalorder %s719_s21, %s719_s21 }
   0xb   :  { %p726_p6 = por %p725_p5, %p724_p4 }
   0xd   :  { %p727_p7 = pnand %p726_p6, %p720_p3 }
   0xf   :  { %730 = shalt.err (!%p727_p7)
}
  0x10   :  { %s758_s22 = smov 64   ;;  %s759_s23 = smov 4  }
  0x11   :  { %23 = dma.hbm_to_vmem [thread:$0]  %s863_s1, 4096, %s18_s13, [#allocation3], %s758_s22, %s758_s22, %s759_s23  }
  0x12   :  { %753 = dma.done.wait [#allocation3], 4096  }
  0x13   :  { %754 = vsyncadd [#allocation3], 4294963200  ;;  %v760_v0 = vmov 0.0   ;;  %vm761_vm0 = vmmov 0   ;;  %v667_v1 = vld [vmem:[#allocation2] sm:$0xff]   ;;  %v668_v2 = vld [vmem:[#allocation2 + $0x8] sm:$0xff]  }
  0x14   :  { %581 = vmatprep.subr.bf16.mxu0 %v760_v0  ;;  %597 = vmatprep.mubr.msk.bf16.mxu0 %vm761_vm0, %v760_v0  ;;  %v669_v3 = vld [vmem:[#allocation2 + $0x10] sm:$0xff]   ;;  %v675_v4 = vld [vmem:[#allocation2 + $0x40] sm:$0xff]   ;;  %v670_v5 = vld [vmem:[#allocation2 + $0x18] sm:$0xff]   ;;  %s762_s7 = smov [#allocation5]  }
  0x15   :  { %601 = vmatprep.subr.bf16.mxu1 %v760_v0  ;;  %617 = vmatprep.mubr.msk.bf16.mxu1 %vm761_vm0, %v760_v0  ;;  %v676_v6 = vld [vmem:[#allocation2 + $0x48] sm:$0xff]   ;;  %v671_v7 = vld [vmem:[#allocation2 + $0x20] sm:$0xff]   ;;  %v677_v9 = vld [vmem:[#allocation2 + $0x50] sm:$0xff]   ;;  %s497_s8 = sshll.u32 %s762_s7, 4  ;;  %s498_s8 = int_to_ptr.vmem [resolvable:$true] %s497_s8 }
  0x16   :  { %582 = vmatpush3.bf16.msra.mxu0 %v667_v1  ;;  %602 = vmatpush3.bf16.msra.mxu1 %v675_v4  ;;  %v30_v8 = vld [vmem:[%s862_s0] sm:$0xff]  ;;  %v672_v10 = vld [vmem:[#allocation2 + $0x28] sm:$0xff]   ;;  %v678_v11 = vld [vmem:[#allocation2 + $0x58] sm:$0xff]   ;;  %s731_s9 = scalar_lea.vmem %s498_s8, 128  ;;  %p736_p9 = scmp.lt.s32.totalorder %s498_s8, %s498_s8 }
  0x17   :  { %583 = vmatprep.subr.bf16.mxu0 %v760_v0  ;;  %603 = vmatprep.subr.bf16.mxu1 %v760_v0  ;;  %699 = vtanh.f32 %v30_v8  ;;  %v673_v12 = vld [vmem:[#allocation2 + $0x30] sm:$0xff]   ;;  %v674_v14 = vld [vmem:[#allocation2 + $0x38] sm:$0xff]   ;;  %v679_v16 = vld [vmem:[#allocation2 + $0x60] sm:$0xff]   ;;  %p732_p8 = scmp.ne.s32.totalorder %s498_s8, %s731_s9  ;;  %p737_p10 = scmp.lt.s32.totalorder %s731_s9, %s731_s9 }
  0x18   :  { %v680_v17 = vld [vmem:[#allocation2 + $0x68] sm:$0xff]   ;;  %v681_v18 = vld [vmem:[#allocation2 + $0x70] sm:$0xff]   ;;  %v682_v19 = vld [vmem:[#allocation2 + $0x78] sm:$0xff]  }
  0x19   :  { %v683_v20 = vld [vmem:[#allocation2 + $0x80] sm:$0xff]   ;;  %v684_v21 = vld [vmem:[#allocation2 + $0x88] sm:$0xff]   ;;  %v685_v22 = vld [vmem:[#allocation2 + $0x90] sm:$0xff]   ;;  %p738_p11 = por %p737_p10, %p736_p9 }
  0x1a   :  { %584 = vmatpush3.bf16.msra.mxu0 %v668_v2  ;;  %604 = vmatpush3.bf16.msra.mxu1 %v676_v6  ;;  %v686_v23 = vld [vmem:[#allocation2 + $0x98] sm:$0xff]   ;;  %v506_v24 = vld [vmem:[%s864_s2] ss:$0 sm:$0xff]  ;;  %v688_v33 = vld [vmem:[#allocation2 + $0xa8] sm:$0xff]  }
  0x1b   :  { %585 = vmatprep.subr.bf16.mxu0 %v760_v0  ;;  %605 = vmatprep.subr.bf16.mxu1 %v760_v0  ;;  %v687_v32 = vld [vmem:[#allocation2 + $0xa0] sm:$0xff]   ;;  %v689_v34 = vld [vmem:[#allocation2 + $0xb0] sm:$0xff]   ;;  %v690_v35 = vld [vmem:[#allocation2 + $0xb8] sm:$0xff]   ;;  %p739_p12 = pnand %p738_p11, %p732_p8 }
  0x1c   :  { %v691_v36 = vld [vmem:[#allocation2 + $0xc0] sm:$0xff]   ;;  %v692_v37 = vld [vmem:[#allocation2 + $0xc8] sm:$0xff]   ;;  %v693_v38 = vld [vmem:[#allocation2 + $0xd0] sm:$0xff]  }
  0x1d   :  { %v694_v39 = vld [vmem:[#allocation2 + $0xd8] sm:$0xff]   ;;  %v516_v40 = vld [vmem:[%s864_s2 + $0x1] ss:$0 sm:$0xff]  ;;  %v696_v49 = vld [vmem:[#allocation2 + $0xe8] sm:$0xff]  }
  0x1e   :  { %586 = vmatpush3.bf16.msra.mxu0 %v669_v3  ;;  %606 = vmatpush3.bf16.msra.mxu1 %v677_v9  ;;  %v695_v48 = vld [vmem:[#allocation2 + $0xe0] sm:$0xff]   ;;  %v697_v50 = vld [vmem:[#allocation2 + $0xf0] sm:$0xff]   ;;  %v698_v51 = vld [vmem:[#allocation2 + $0xf8] sm:$0xff]  }
  0x1f   :  { %587 = vmatprep.subr.bf16.mxu0 %v760_v0  ;;  %607 = vmatprep.subr.bf16.mxu1 %v760_v0  ;;  %v526_v52 = vld [vmem:[%s864_s2 + $0x2] ss:$0 sm:$0xff]  ;;  %v536_v60 = vld [vmem:[%s864_s2 + $0x3] ss:$0 sm:$0xff] }
  0x21   :  { %v700_v13 = vpop.eup %699 }
  0x22   :  { %588 = vmatpush3.bf16.msra.mxu0 %v670_v5  ;;  %608 = vmatpush3.bf16.msra.mxu1 %v678_v11  ;;  %v32_v15 = vpack.c.bf16 %v700_v13, %v700_v13 }
  0x23   :  { %589 = vmatprep.subr.bf16.mxu0 %v760_v0  ;;  %609 = vmatprep.subr.bf16.mxu1 %v760_v0 }
  0x26   :  { %590 = vmatpush3.bf16.msra.mxu0 %v671_v7  ;;  %610 = vmatpush3.bf16.msra.mxu1 %v679_v16 }
  0x27   :  { %591 = vmatprep.subr.bf16.mxu0 %v760_v0  ;;  %611 = vmatprep.subr.bf16.mxu1 %v760_v0 }
  0x2a   :  { %592 = vmatpush3.bf16.msra.mxu0 %v672_v10  ;;  %612 = vmatpush3.bf16.msra.mxu1 %v680_v17 }
  0x2b   :  { %593 = vmatprep.subr.bf16.mxu0 %v760_v0  ;;  %613 = vmatprep.subr.bf16.mxu1 %v760_v0 }
  0x2e   :  { %594 = vmatpush3.bf16.msra.mxu0 %v673_v12  ;;  %614 = vmatpush3.bf16.msra.mxu1 %v681_v18 }
  0x2f   :  { %595 = vmatprep.subr.bf16.mxu0 %v760_v0  ;;  %615 = vmatprep.subr.bf16.mxu1 %v760_v0 }
  0x32   :  { %596 = vmatpush3.bf16.msra.mxu0 %v674_v14  ;;  %616 = vmatpush3.bf16.msra.mxu1 %v682_v19 }
  0x33   :  { %621 = vmatprep.subr.bf16.mxu0 %v760_v0  ;;  %641 = vmatprep.subr.bf16.mxu1 %v760_v0 }
  0x35   :  { %598 = vmatmul.mubr.bf16.vlgmr.msra.gmra.mrb[0].mxu0 %v32_v15 }
  0x36   :  { %637 = vmatprep.mubr.msk.bf16.mxu0 %vm761_vm0, %v760_v0  ;;  %622 = vmatpush3.bf16.msra.mxu0 %v683_v20 }
  0x37   :  { %623 = vmatprep.subr.bf16.mxu0 %v760_v0 }
  0x3a   :  { %624 = vmatpush3.bf16.msra.mxu0 %v684_v21 }
  0x3b   :  { %625 = vmatprep.subr.bf16.mxu0 %v760_v0 }
  0x3e   :  { %626 = vmatpush3.bf16.msra.mxu0 %v685_v22 }
  0x3f   :  { %627 = vmatprep.subr.bf16.mxu0 %v760_v0 }
  0x42   :  { %628 = vmatpush3.bf16.msra.mxu0 %v686_v23 }
  0x43   :  { %629 = vmatprep.subr.bf16.mxu0 %v760_v0 }
  0x46   :  { %630 = vmatpush3.bf16.msra.mxu0 %v687_v32 }
  0x47   :  { %631 = vmatprep.subr.bf16.mxu0 %v760_v0 }
  0x4a   :  { %632 = vmatpush3.bf16.msra.mxu0 %v688_v33 }
  0x4b   :  { %633 = vmatprep.subr.bf16.mxu0 %v760_v0 }
  0x4e   :  { %634 = vmatpush3.bf16.msra.mxu0 %v689_v34 }
  0x4f   :  { %635 = vmatprep.subr.bf16.mxu0 %v760_v0 }
  0x52   :  { %636 = vmatpush3.bf16.msra.mxu0 %v690_v35 }
 0x108   :  { %v138_v25 = vpop.f32.mrb[0].mxu0 }
 0x109   :  { %v139_v26 = vadd.f32 %v506_v24, %v138_v25  ;;  %v599_v27 = vpop.f32.mrb[1].mxu0 }
 0x10a   :  { %v141_v28 = vpop.f32.mrb[2].mxu0 }
 0x10b   :  { %701 = vtanh.f32 %v139_v26  ;;  %v600_v29 = vpop.f32.mrb[3].mxu0 }
 0x115   :  { %v702_v30 = vpop.eup %701 }
 0x116   :  { %v145_v31 = vpack.c.bf16 %v702_v30, %v702_v30 }
 0x118   :  { %618 = vmatmul.mubr.bf16.vlgmr.msra.gmra.mrb[0].mxu1 %v145_v31 }
 0x119   :  { %657 = vmatprep.mubr.msk.bf16.mxu1 %vm761_vm0, %v760_v0  ;;  %642 = vmatpush3.bf16.msra.mxu1 %v691_v36 }
 0x11a   :  { %643 = vmatprep.subr.bf16.mxu1 %v760_v0 }
 0x11d   :  { %644 = vmatpush3.bf16.msra.mxu1 %v692_v37 }
 0x11e   :  { %645 = vmatprep.subr.bf16.mxu1 %v760_v0 }
 0x121   :  { %646 = vmatpush3.bf16.msra.mxu1 %v693_v38 }
 0x122   :  { %647 = vmatprep.subr.bf16.mxu1 %v760_v0 }
 0x125   :  { %648 = vmatpush3.bf16.msra.mxu1 %v694_v39 }
 0x126   :  { %649 = vmatprep.subr.bf16.mxu1 %v760_v0 }
 0x129   :  { %650 = vmatpush3.bf16.msra.mxu1 %v695_v48 }
 0x12a   :  { %651 = vmatprep.subr.bf16.mxu1 %v760_v0 }
 0x12d   :  { %652 = vmatpush3.bf16.msra.mxu1 %v696_v49 }
 0x12e   :  { %653 = vmatprep.subr.bf16.mxu1 %v760_v0 }
 0x131   :  { %654 = vmatpush3.bf16.msra.mxu1 %v697_v50 }
 0x132   :  { %655 = vmatprep.subr.bf16.mxu1 %v760_v0 }
 0x135   :  { %656 = vmatpush3.bf16.msra.mxu1 %v698_v51 }
 0x1eb   :  { %v253_v41 = vpop.f32.mrb[0].mxu1 }
 0x1ec   :  { %v254_v42 = vadd.f32 %v516_v40, %v253_v41  ;;  %v619_v43 = vpop.f32.mrb[1].mxu1 }
 0x1ed   :  { %v256_v44 = vpop.f32.mrb[2].mxu1 }
 0x1ee   :  { %703 = vtanh.f32 %v254_v42  ;;  %v620_v45 = vpop.f32.mrb[3].mxu1 }
 0x1f8   :  { %v704_v46 = vpop.eup %703 }
 0x1f9   :  { %v260_v47 = vpack.c.bf16 %v704_v46, %v704_v46 }
 0x1fb   :  { %638 = vmatmul.mubr.bf16.vlgmr.msra.gmra.mrb[4].mxu0 %v260_v47 }
 0x2ce   :  { %v368_v53 = vpop.f32.mrb[4].mxu0 }
 0x2cf   :  { %v369_v54 = vadd.f32 %v526_v52, %v368_v53  ;;  %v639_v55 = vpop.f32.mrb[5].mxu0 }
 0x2d0   :  { %v371_v56 = vpop.f32.mrb[6].mxu0 }
 0x2d1   :  { %705 = vtanh.f32 %v369_v54  ;;  %v640_v57 = vpop.f32.mrb[7].mxu0 }
 0x2db   :  { %v706_v58 = vpop.eup %705 }
 0x2dc   :  { %v375_v59 = vpack.c.bf16 %v706_v58, %v706_v58 }
 0x2de   :  { %658 = vmatmul.mubr.bf16.vlgmr.msra.gmra.mrb[4].mxu1 %v375_v59 }
 0x3b1   :  { %v483_v61 = vpop.f32.mrb[4].mxu1 }
 0x3b2   :  { %v484_v62 = vadd.f32 %v536_v60, %v483_v61  ;;  %v659_v63 = vpop.f32.mrb[5].mxu1 }
 0x3b3   :  { %v486_v0 = vpop.f32.mrb[6].mxu1 }
 0x3b4   :  { %707 = vtanh.f32 %v484_v62  ;;  %v660_v1 = vpop.f32.mrb[7].mxu1 }
 0x3be   :  { %v708_v2 = vpop.eup %707 }
 0x3bf   :  { %490 = vst [vmem:[#allocation5] sm:$0xff] %v708_v2 }
 0x3c0   :  { %742 = shalt.err (!%p739_p12)
}
 0x3c1   :  { %s743_s11 = scalar_lea.hbm %s865_s3, 128 }
 0x3c2   :  { %p744_p13 = scmp.ne.s32.totalorder %s865_s3, %s743_s11  ;;  %p747_p0 = scmp.lt.u32.totalorder %s743_s11, %s865_s3 }
 0x3c4   :  { %p749_p1 = pnand %p747_p0, %p744_p13 }
 0x3c6   :  { %752 = shalt.err (!%p749_p1)
}
 0x3c7   :  { %500 = dma.vmem_to_hbm [thread:$0]  %s498_s8, 128, %s865_s3, [#allocation4]  }
 0x3c8   :  { %755 = dma.done.wait [#allocation4], 128  }
 0x3c9   :  { %756 = vsyncadd [#allocation4], 4294967168 }
 0x3ca   :  { %504 = vsyncpa [#allocation3], 1 }
 0x3cb   :  { %505 = vsyncpa [#allocation4], 1 }

</bundles_post_ra>
